<compile_context>
chip_gen: v7x
topology: tpu7x:2x2x1
jax: 0.10.0
libtpu: 0.0.40
codegen_flags: <defaults>
</compile_context>

<pallas_src>
import jax
import jax.numpy as jnp
from jax.experimental import pallas as pl
from jax.experimental.pallas import tpu as pltpu

INPUT_SIZE = 17
HIDDEN_SIZE = 64
OUTPUT_SIZE = 17
LANE = 128          # lane-dense padded feature width for the input / output
MAX_TB = 2048       # max batch tile (rows); multiple of 8; VMEM-safe on v5e/v6e/v7x
                    # (2 streamed buffers * 2 (in+out) * 2048*128*4B = 4 MiB)


def posenet_kernel(x_ref,
                   w1_ref, b1_ref,
                   w2_ref, b2_ref,
                   w3_ref, b3_ref,
                   w4_ref, b4_ref,
                   o_ref):
    x = x_ref[...]                                                     # (TB, 128)

    h = jnp.dot(x, w1_ref[...], preferred_element_type=jnp.float32)   # (TB, 64)
    h = jnp.maximum(h + b1_ref[...], 0.0)                             # relu(fc1)

    h = jnp.dot(h, w2_ref[...], preferred_element_type=jnp.float32)
    h = jnp.maximum(h + b2_ref[...], 0.0)                             # relu(fc2)

    h = jnp.dot(h, w3_ref[...], preferred_element_type=jnp.float32)
    h = jnp.maximum(h + b3_ref[...], 0.0)                             # relu(fc3)

    y = jnp.dot(h, w4_ref[...], preferred_element_type=jnp.float32)   # (TB, 128)
    o_ref[...] = (y + b4_ref[...]).astype(o_ref.dtype)                # fc4 (no relu)


def _round_up(n, m):
    return ((n + m - 1) // m) * m


def _posenet_padded_call(x_p, args, tb):
    """x_p: (PB, LANE) lane-dense padded input; args: padded params tuple."""
    pb = x_p.shape[0]

    tile_spec = pl.BlockSpec((tb, LANE), lambda i: (i, 0))           # streamed tiles
    resident = lambda a: pl.BlockSpec(a.shape, lambda i: (0, 0))     # VMEM-resident params
    in_specs = [tile_spec] + [resident(a) for a in args]

    return pl.pallas_call(
        posenet_kernel,
        out_shape=jax.ShapeDtypeStruct((pb, LANE), jnp.float32),
        grid=(pb // tb,),
        in_specs=in_specs,
        out_specs=tile_spec,
        compiler_params=pltpu.CompilerParams(
            dimension_semantics=("parallel",)),
    )(x_p, *args)


@jax.jit
def posenet_forward(x, params):
    """x: (B, INPUT_SIZE) float32.  params: dict of weights/biases."""
    B = x.shape[0]

    # Pick a batch tile: single block for small batches, MAX_TB rows otherwise.
    pb = _round_up(B, 8)
    if pb <= MAX_TB:
        tb = pb
    else:
        tb = MAX_TB
        pb = _round_up(B, tb)

    # Lane-dense zero padding of the 17-wide feature dims to 128 lanes.
    x_p = jnp.zeros((pb, LANE), jnp.float32).at[:B, :INPUT_SIZE].set(x)
    w1_p = jnp.zeros((LANE, HIDDEN_SIZE), jnp.float32).at[:INPUT_SIZE, :].set(params["w1"])
    w4_p = jnp.zeros((HIDDEN_SIZE, LANE), jnp.float32).at[:, :OUTPUT_SIZE].set(params["w4"])
    b4_p = jnp.zeros((1, LANE), jnp.float32).at[:, :OUTPUT_SIZE].set(params["b4"])

    args = (
        w1_p, params["b1"],
        params["w2"], params["b2"],
        params["w3"], params["b3"],
        w4_p, b4_p,
    )

    out_p = _posenet_padded_call(x_p, args, tb)
    return out_p[:B, :OUTPUT_SIZE]


def init_params(key):
    """Deterministic init mimicking nn.Linear's U(-1/sqrt(fan_in), 1/sqrt(fan_in))."""
    dims = [(INPUT_SIZE, HIDDEN_SIZE),
            (HIDDEN_SIZE, HIDDEN_SIZE),
            (HIDDEN_SIZE, HIDDEN_SIZE),
            (HIDDEN_SIZE, OUTPUT_SIZE)]
    params = {}
    keys = jax.random.split(key, 2 * len(dims))
    for i, (fan_in, fan_out) in enumerate(dims):
        bound = 1.0 / jnp.sqrt(jnp.float32(fan_in))
        w = jax.random.uniform(keys[2 * i], (fan_in, fan_out),
                               minval=-bound, maxval=bound, dtype=jnp.float32)
        b = jax.random.uniform(keys[2 * i + 1], (1, fan_out),
                               minval=-bound, maxval=bound, dtype=jnp.float32)
        params[f"w{i + 1}"] = w
        params[f"b{i + 1}"] = b
    return params


def posenet_ref(x, p):
    """Pure-JAX reference of the PyTorch forward pass."""
    h = jnp.maximum(x @ p["w1"] + p["b1"], 0.0)
    h = jnp.maximum(h @ p["w2"] + p["b2"], 0.0)
    h = jnp.maximum(h @ p["w3"] + p["b3"], 0.0)
    return h @ p["w4"] + p["b4"]


if __name__ == "__main__":
    key = jax.random.PRNGKey(0)
    k_params, k_x = jax.random.split(key)

    params = init_params(k_params)
    batch = 8
    x = jax.random.normal(k_x, (batch, INPUT_SIZE), dtype=jnp.float32)

    out = posenet_forward(x, params)
    out = jax.block_until_ready(out)

    ref = posenet_ref(x, params)
    assert out.shape == (batch, OUTPUT_SIZE), out.shape
    assert jnp.allclose(out, ref, atol=1e-4, rtol=1e-4), \
        f"max abs err {jnp.max(jnp.abs(out - ref))}"

    print("KERNEL_OK")
</pallas_src>

<mosaic_0001>
module attributes {stable_mosaic.version = 11 : i64} {
  func.func @posenet_kernel(%arg0: i32, %arg1: memref<8x128xf32, #tpu.memory_space<vmem>>, %arg2: memref<128x64xf32, #tpu.memory_space<vmem>>, %arg3: memref<1x64xf32, #tpu.memory_space<vmem>>, %arg4: memref<64x64xf32, #tpu.memory_space<vmem>>, %arg5: memref<1x64xf32, #tpu.memory_space<vmem>>, %arg6: memref<64x64xf32, #tpu.memory_space<vmem>>, %arg7: memref<1x64xf32, #tpu.memory_space<vmem>>, %arg8: memref<64x128xf32, #tpu.memory_space<vmem>>, %arg9: memref<1x128xf32, #tpu.memory_space<vmem>>, %arg10: memref<8x128xf32, #tpu.memory_space<vmem>>) attributes {dimension_semantics = [#tpu.dimension_semantics<parallel>], iteration_bounds = array<i64: 1>, scalar_prefetch = 0 : i64, scratch_operands = 0 : i64, tpu.core_type = #tpu.core_type<tc>, window_params = [{transform_indices = @transform_0, window_bounds = array<i64: 8, 128>}, {pipeline_mode = #tpu.pipeline_mode<synchronous>, transform_indices = @transform_1, window_bounds = array<i64: 128, 64>}, {pipeline_mode = #tpu.pipeline_mode<synchronous>, transform_indices = @transform_2, window_bounds = array<i64: 1, 64>}, {pipeline_mode = #tpu.pipeline_mode<synchronous>, transform_indices = @transform_3, window_bounds = array<i64: 64, 64>}, {pipeline_mode = #tpu.pipeline_mode<synchronous>, transform_indices = @transform_4, window_bounds = array<i64: 1, 64>}, {pipeline_mode = #tpu.pipeline_mode<synchronous>, transform_indices = @transform_5, window_bounds = array<i64: 64, 64>}, {pipeline_mode = #tpu.pipeline_mode<synchronous>, transform_indices = @transform_6, window_bounds = array<i64: 1, 64>}, {pipeline_mode = #tpu.pipeline_mode<synchronous>, transform_indices = @transform_7, window_bounds = array<i64: 64, 128>}, {pipeline_mode = #tpu.pipeline_mode<synchronous>, transform_indices = @transform_8, window_bounds = array<i64: 1, 128>}, {transform_indices = @transform_9, window_bounds = array<i64: 8, 128>}]} {
    %c0 = arith.constant 0 : index
    %c0_0 = arith.constant 0 : index
    %0 = vector.load %arg1[%c0, %c0_0] : memref<8x128xf32, #tpu.memory_space<vmem>>, vector<8x128xf32>
    %c0_1 = arith.constant 0 : index
    %c0_2 = arith.constant 0 : index
    %1 = vector.load %arg2[%c0_1, %c0_2] : memref<128x64xf32, #tpu.memory_space<vmem>>, vector<128x64xf32>
    %cst = arith.constant dense<0.000000e+00> : vector<8x64xf32>
    %2 = tpu.matmul %0, %1, %cst {dimension_numbers = #tpu.dot_dimension_numbers<[1], [0], [0], [1], [0, 0, 1, 1], [], []>} : vector<8x128xf32>, vector<128x64xf32>, vector<8x64xf32> -> vector<8x64xf32>
    %c0_3 = arith.constant 0 : index
    %c0_4 = arith.constant 0 : index
    %3 = vector.load %arg3[%c0_3, %c0_4] : memref<1x64xf32, #tpu.memory_space<vmem>>, vector<1x64xf32>
    %4 = vector.broadcast %3 : vector<1x64xf32> to vector<8x64xf32>
    %5 = arith.addf %2, %4 : vector<8x64xf32>
    %cst_5 = arith.constant 0.000000e+00 : f32
    %6 = vector.broadcast %cst_5 : f32 to vector<8x64xf32>
    %7 = arith.maximumf %5, %6 : vector<8x64xf32>
    %c0_6 = arith.constant 0 : index
    %c0_7 = arith.constant 0 : index
    %8 = vector.load %arg4[%c0_6, %c0_7] : memref<64x64xf32, #tpu.memory_space<vmem>>, vector<64x64xf32>
    %cst_8 = arith.constant dense<0.000000e+00> : vector<8x64xf32>
    %9 = tpu.matmul %7, %8, %cst_8 {dimension_numbers = #tpu.dot_dimension_numbers<[1], [0], [0], [1], [0, 0, 1, 1], [], []>} : vector<8x64xf32>, vector<64x64xf32>, vector<8x64xf32> -> vector<8x64xf32>
    %c0_9 = arith.constant 0 : index
    %c0_10 = arith.constant 0 : index
    %10 = vector.load %arg5[%c0_9, %c0_10] : memref<1x64xf32, #tpu.memory_space<vmem>>, vector<1x64xf32>
    %11 = vector.broadcast %10 : vector<1x64xf32> to vector<8x64xf32>
    %12 = arith.addf %9, %11 : vector<8x64xf32>
    %cst_11 = arith.constant 0.000000e+00 : f32
    %13 = vector.broadcast %cst_11 : f32 to vector<8x64xf32>
    %14 = arith.maximumf %12, %13 : vector<8x64xf32>
    %c0_12 = arith.constant 0 : index
    %c0_13 = arith.constant 0 : index
    %15 = vector.load %arg6[%c0_12, %c0_13] : memref<64x64xf32, #tpu.memory_space<vmem>>, vector<64x64xf32>
    %cst_14 = arith.constant dense<0.000000e+00> : vector<8x64xf32>
    %16 = tpu.matmul %14, %15, %cst_14 {dimension_numbers = #tpu.dot_dimension_numbers<[1], [0], [0], [1], [0, 0, 1, 1], [], []>} : vector<8x64xf32>, vector<64x64xf32>, vector<8x64xf32> -> vector<8x64xf32>
    %c0_15 = arith.constant 0 : index
    %c0_16 = arith.constant 0 : index
    %17 = vector.load %arg7[%c0_15, %c0_16] : memref<1x64xf32, #tpu.memory_space<vmem>>, vector<1x64xf32>
    %18 = vector.broadcast %17 : vector<1x64xf32> to vector<8x64xf32>
    %19 = arith.addf %16, %18 : vector<8x64xf32>
    %cst_17 = arith.constant 0.000000e+00 : f32
    %20 = vector.broadcast %cst_17 : f32 to vector<8x64xf32>
    %21 = arith.maximumf %19, %20 : vector<8x64xf32>
    %c0_18 = arith.constant 0 : index
    %c0_19 = arith.constant 0 : index
    %22 = vector.load %arg8[%c0_18, %c0_19] : memref<64x128xf32, #tpu.memory_space<vmem>>, vector<64x128xf32>
    %cst_20 = arith.constant dense<0.000000e+00> : vector<8x128xf32>
    %23 = tpu.matmul %21, %22, %cst_20 {dimension_numbers = #tpu.dot_dimension_numbers<[1], [0], [0], [1], [0, 0, 1, 1], [], []>} : vector<8x64xf32>, vector<64x128xf32>, vector<8x128xf32> -> vector<8x128xf32>
    %c0_21 = arith.constant 0 : index
    %c0_22 = arith.constant 0 : index
    %24 = vector.load %arg9[%c0_21, %c0_22] : memref<1x128xf32, #tpu.memory_space<vmem>>, vector<1x128xf32>
    %25 = vector.broadcast %24 : vector<1x128xf32> to vector<8x128xf32>
    %26 = arith.addf %23, %25 : vector<8x128xf32>
    %c0_23 = arith.constant 0 : index
    %c0_24 = arith.constant 0 : index
    %27 = vector.load %arg10[%c0_23, %c0_24] : memref<8x128xf32, #tpu.memory_space<vmem>>, vector<8x128xf32>
    tpu.vector_store %arg10[%c0_23, %c0_24], %26 {strides = array<i32>} : memref<8x128xf32, #tpu.memory_space<vmem>>, vector<8x128xf32>,
    return
  }
  func.func @transform_0(%arg0: i32) -> (i32, i32) {
    %c0_i32 = arith.constant 0 : i32
    %c0_i32_0 = arith.constant 0 : i32
    return %arg0, %c0_i32 : i32, i32
  }
  func.func @transform_1(%arg0: i32) -> (i32, i32) {
    %c0_i32 = arith.constant 0 : i32
    %c0_i32_0 = arith.constant 0 : i32
    %c0_i32_1 = arith.constant 0 : i32
    return %c0_i32, %c0_i32_0 : i32, i32
  }
  func.func @transform_2(%arg0: i32) -> (i32, i32) {
    %c0_i32 = arith.constant 0 : i32
    %c0_i32_0 = arith.constant 0 : i32
    %c0_i32_1 = arith.constant 0 : i32
    return %c0_i32, %c0_i32_0 : i32, i32
  }
  func.func @transform_3(%arg0: i32) -> (i32, i32) {
    %c0_i32 = arith.constant 0 : i32
    %c0_i32_0 = arith.constant 0 : i32
    %c0_i32_1 = arith.constant 0 : i32
    return %c0_i32, %c0_i32_0 : i32, i32
  }
  func.func @transform_4(%arg0: i32) -> (i32, i32) {
    %c0_i32 = arith.constant 0 : i32
    %c0_i32_0 = arith.constant 0 : i32
    %c0_i32_1 = arith.constant 0 : i32
    return %c0_i32, %c0_i32_0 : i32, i32
  }
  func.func @transform_5(%arg0: i32) -> (i32, i32) {
    %c0_i32 = arith.constant 0 : i32
    %c0_i32_0 = arith.constant 0 : i32
    %c0_i32_1 = arith.constant 0 : i32
    return %c0_i32, %c0_i32_0 : i32, i32
  }
  func.func @transform_6(%arg0: i32) -> (i32, i32) {
    %c0_i32 = arith.constant 0 : i32
    %c0_i32_0 = arith.constant 0 : i32
    %c0_i32_1 = arith.constant 0 : i32
    return %c0_i32, %c0_i32_0 : i32, i32
  }
  func.func @transform_7(%arg0: i32) -> (i32, i32) {
    %c0_i32 = arith.constant 0 : i32
    %c0_i32_0 = arith.constant 0 : i32
    %c0_i32_1 = arith.constant 0 : i32
    return %c0_i32, %c0_i32_0 : i32, i32
  }
  func.func @transform_8(%arg0: i32) -> (i32, i32) {
    %c0_i32 = arith.constant 0 : i32
    %c0_i32_0 = arith.constant 0 : i32
    %c0_i32_1 = arith.constant 0 : i32
    return %c0_i32, %c0_i32_0 : i32, i32
  }
  func.func @transform_9(%arg0: i32) -> (i32, i32) {
    %c0_i32 = arith.constant 0 : i32
    %c0_i32_0 = arith.constant 0 : i32
    return %arg0, %c0_i32 : i32, i32
  }
}

</mosaic_0001>

<bundles_post_ra>
// kernel: posenet_forward.1
= control target key start
LH: loop header
LB: loop body
LE: loop exit
PB: predicated region body
PF: predicated region fallthrough
CT: control target
= control target key end

     0   :  { %v641_v3 = vmov 0.0|0.0   ;;  %vm642_vm0 = vmmov 0   ;;  %v643_v6 = vmov 0.0   ;;  %s873_s0 = inlined_call_operand.vmem [shape: f32[8,128], index: 0, kind: input, shape index: {}]   ;;  %s874_s1 = inlined_call_operand.vmem [shape: f32[128,64], index: 1, kind: input, shape index: {}]   ;;  %s875_s2 = inlined_call_operand.vmem [shape: f32[1,64], index: 2, kind: input, shape index: {}]   ;;  %s876_s3 = inlined_call_operand.vmem [shape: f32[64,64], index: 3, kind: input, shape index: {}]   ;;  %s877_s4 = inlined_call_operand.vmem [shape: f32[1,64], index: 4, kind: input, shape index: {}]   ;;  %s878_s5 = inlined_call_operand.vmem [shape: f32[64,64], index: 5, kind: input, shape index: {}]   ;;  %s879_s6 = inlined_call_operand.vmem [shape: f32[1,64], index: 6, kind: input, shape index: {}]   ;;  %s880_s7 = inlined_call_operand.vmem [shape: f32[64,128], index: 7, kind: input, shape index: {}]   ;;  %s881_s8 = inlined_call_operand.vmem [shape: f32[1,128], index: 8, kind: input, shape index: {}]   ;;  %s882_s9 = inlined_call_operand.hbm [shape: f32[8,128], index: 9, kind: output, shape index: {}]  }
   0x1   :  { %v34_v0 = vld [vmem:[%s874_s1] sm:$0xff]  ;;  %v35_v1 = vld [vmem:[%s874_s1 + $0x8] sm:$0xff]  ;;  %v36_v2 = vld [vmem:[%s874_s1 + $0x10] sm:$0xff]  ;;  %553 = vmatprep.subr.bf16.mxu0 %v641_v3  ;;  %493 = vmatprep.mubr.msk.f32.mxu0 %vm642_vm0, %v643_v6 }
   0x2   :  { %v554_v4 = vpack.c.bf16 %v35_v1, %v34_v0  ;;  %v37_v5 = vld [vmem:[%s874_s1 + $0x18] sm:$0xff]  ;;  %577 = vmatprep.subr.bf16.mxu1 %v641_v3  ;;  %512 = vmatprep.mubr.msk.f32.mxu1 %vm642_vm0, %v643_v6  ;;  %v38_v8 = vld [vmem:[%s874_s1 + $0x20] sm:$0xff]  ;;  %v39_v9 = vld [vmem:[%s874_s1 + $0x28] sm:$0xff] }
   0x3   :  { %v557_v7 = vpack.c.bf16 %v37_v5, %v36_v2  ;;  %v128_v10 = vld [vmem:[%s876_s3] sm:$0xff]  ;;  %v129_v11 = vld [vmem:[%s876_s3 + $0x8] sm:$0xff]  ;;  %v130_v12 = vld [vmem:[%s876_s3 + $0x10] sm:$0xff]  ;;  %v560_v14 = vpack.c.bf16 %v39_v9, %v38_v8 }
   0x4   :  { %555 = vmatpush3.bf16.msra.mxu0 %v554_v4  ;;  %v131_v13 = vld [vmem:[%s876_s3 + $0x18] sm:$0xff]  ;;  %v578_v15 = vpack.c.bf16 %v129_v11, %v128_v10  ;;  %v40_v16 = vld [vmem:[%s874_s1 + $0x30] sm:$0xff] }
   0x5   :  { %556 = vmatprep.subr.bf16.mxu0 %v641_v3  ;;  %v41_v17 = vld [vmem:[%s874_s1 + $0x38] sm:$0xff] }
   0x8   :  { %558 = vmatpush3.bf16.msra.mxu0 %v557_v7 }
   0x9   :  { %559 = vmatprep.subr.bf16.mxu0 %v641_v3 }
   0xa   :  { %14 = vsyncpa [#allocation3], 0  ;;  %579 = vmatpush3.bf16.msra.mxu1 %v578_v15  ;;  %v581_v18 = vpack.c.bf16 %v131_v13, %v130_v12  ;;  %v132_v19 = vld [vmem:[%s876_s3 + $0x20] sm:$0xff]  ;;  %v133_v20 = vld [vmem:[%s876_s3 + $0x28] sm:$0xff]  ;;  %v563_v21 = vpack.c.bf16 %v41_v17, %v40_v16  ;;  %vm143_vm1 = vcmask 523264   ;;  %s644_s26 = smov [#allocation2]  }
   0xb   :  { %580 = vmatprep.subr.bf16.mxu1 %v641_v3  ;;  %v42_v22 = vld [vmem:[%s874_s1 + $0x40] sm:$0xff]  ;;  %v43_v23 = vld [vmem:[%s874_s1 + $0x48] sm:$0xff]  ;;  %v584_v24 = vpack.c.bf16 %v133_v20, %v132_v19  ;;  %v44_v26 = vld [vmem:[%s874_s1 + $0x50] sm:$0xff]  ;;  %s402_s27 = sshll.u32 %s644_s26, 4  ;;  %s403_s27 = int_to_ptr.vmem [resolvable:$true] %s402_s27 }
   0xc   :  { %561 = vmatpush3.bf16.msra.mxu0 %v560_v14  ;;  %v566_v25 = vpack.c.bf16 %v43_v23, %v42_v22  ;;  %v45_v27 = vld [vmem:[%s874_s1 + $0x58] sm:$0xff]  ;;  %v46_v29 = vld [vmem:[%s874_s1 + $0x60] sm:$0xff]  ;;  %v47_v30 = vld [vmem:[%s874_s1 + $0x68] sm:$0xff]  ;;  %p622_p1 = scmp.lt.s32.totalorder %s403_s27, %s403_s27 }
   0xd   :  { %562 = vmatprep.subr.bf16.mxu0 %v641_v3  ;;  %v569_v28 = vpack.c.bf16 %v45_v27, %v44_v26  ;;  %v572_v31 = vpack.c.bf16 %v47_v30, %v46_v29  ;;  %v48_v32 = vld [vmem:[%s874_s1 + $0x70] sm:$0xff]  ;;  %v49_v33 = vld [vmem:[%s874_s1 + $0x78] sm:$0xff]  ;;  %v33_v35 = vld [vmem:[%s873_s0] sm:$0xff] }
   0xe   :  { %582 = vmatpush3.bf16.msra.mxu1 %v581_v18  ;;  %v575_v34 = vpack.c.bf16 %v49_v33, %v48_v32  ;;  %v134_v36 = vld [vmem:[%s876_s3 + $0x30] sm:$0xff]  ;;  %v135_v37 = vld [vmem:[%s876_s3 + $0x38] sm:$0xff]  ;;  %v410_v39 = vld [vmem:[%s875_s2] ss:$0 sm:$0xff] }
   0xf   :  { %583 = vmatprep.subr.bf16.mxu1 %v641_v3  ;;  %v587_v38 = vpack.c.bf16 %v135_v37, %v134_v36  ;;  %v218_v40 = vld [vmem:[%s878_s5] sm:$0xff]  ;;  %v219_v41 = vld [vmem:[%s878_s5 + $0x8] sm:$0xff]  ;;  %v220_v47 = vld [vmem:[%s878_s5 + $0x10] sm:$0xff] }
  0x10   :  { %564 = vmatpush3.bf16.msra.mxu0 %v563_v21  ;;  %v590_v45 = vpack.c.bf16 %v219_v41, %v218_v40  ;;  %v221_v48 = vld [vmem:[%s878_s5 + $0x18] sm:$0xff]  ;;  %v222_v50 = vld [vmem:[%s878_s5 + $0x20] sm:$0xff]  ;;  %v223_v51 = vld [vmem:[%s878_s5 + $0x28] sm:$0xff] }
  0x11   :  { %565 = vmatprep.subr.bf16.mxu0 %v641_v3  ;;  %v593_v49 = vpack.c.bf16 %v221_v48, %v220_v47  ;;  %v596_v52 = vpack.c.bf16 %v223_v51, %v222_v50  ;;  %v224_v53 = vld [vmem:[%s878_s5 + $0x30] sm:$0xff]  ;;  %v225_v54 = vld [vmem:[%s878_s5 + $0x38] sm:$0xff]  ;;  %v307_v56 = vld [vmem:[%s880_s7] sm:$0xff] }
  0x12   :  { %585 = vmatpush3.bf16.msra.mxu1 %v584_v24  ;;  %v599_v55 = vpack.c.bf16 %v225_v54, %v224_v53  ;;  %v308_v57 = vld [vmem:[%s880_s7 + $0x8] sm:$0xff]  ;;  %v309_v58 = vld [vmem:[%s880_s7 + $0x10] sm:$0xff]  ;;  %v310_v60 = vld [vmem:[%s880_s7 + $0x18] sm:$0xff] }
  0x13   :  { %586 = vmatprep.subr.bf16.mxu1 %v641_v3  ;;  %v602_v59 = vpack.c.bf16 %v308_v57, %v307_v56  ;;  %v605_v61 = vpack.c.bf16 %v310_v60, %v309_v58  ;;  %v311_v62 = vld [vmem:[%s880_s7 + $0x20] sm:$0xff]  ;;  %v312_v63 = vld [vmem:[%s880_s7 + $0x28] sm:$0xff]  ;;  %v313_v7 = vld [vmem:[%s880_s7 + $0x30] sm:$0xff] }
  0x14   :  { %567 = vmatpush3.bf16.msra.mxu0 %v566_v25  ;;  %v608_v0 = vpack.c.bf16 %v312_v63, %v311_v62  ;;  %v411_v1 = vld [vmem:[%s877_s4] ss:$0 sm:$0xff]  ;;  %v314_v8 = vld [vmem:[%s880_s7 + $0x38] sm:$0xff]  ;;  %s617_s7 = scalar_lea.vmem %s403_s27, 128 }
  0x15   :  { %568 = vmatprep.subr.bf16.mxu0 %v641_v3  ;;  %v611_v9 = vpack.c.bf16 %v314_v8, %v313_v7  ;;  %v415_v14 = vld [vmem:[%s881_s8] ss:$0 sm:$0xff]  ;;  %p618_p0 = scmp.ne.s32.totalorder %s403_s27, %s617_s7  ;;  %p623_p2 = scmp.lt.s32.totalorder %s617_s7, %s617_s7 }
  0x16   :  { %588 = vmatpush3.bf16.msra.mxu1 %v587_v38 }
  0x17   :  { %589 = vmatprep.subr.bf16.mxu1 %v641_v3  ;;  %p624_p3 = por %p623_p2, %p622_p1 }
  0x18   :  { %570 = vmatpush3.bf16.msra.mxu0 %v569_v28 }
  0x19   :  { %571 = vmatprep.subr.bf16.mxu0 %v641_v3  ;;  %p625_p4 = pnand %p624_p3, %p618_p0 }
  0x1c   :  { %573 = vmatpush3.bf16.msra.mxu0 %v572_v31 }
  0x1d   :  { %574 = vmatprep.subr.bf16.mxu0 %v641_v3 }
  0x20   :  { %576 = vmatpush3.bf16.msra.mxu0 %v575_v34 }
  0x21   :  { %601 = vmatprep.subr.bf16.mxu0 %v641_v3 }
  0x23   :  { %494 = vmatmul.mubr.f32.vlgmr.msra.gmra.mrb[0].mxu0 %v33_v35 }
  0x24   :  { %550 = vmatprep.mubr.msk.f32.mxu0 %vm642_vm0, %v643_v6  ;;  %603 = vmatpush3.bf16.msra.mxu0 %v602_v59 }
  0x25   :  { %604 = vmatprep.subr.bf16.mxu0 %v641_v3 }
  0x28   :  { %606 = vmatpush3.bf16.msra.mxu0 %v605_v61 }
  0x29   :  { %607 = vmatprep.subr.bf16.mxu0 %v641_v3 }
  0x2c   :  { %609 = vmatpush3.bf16.msra.mxu0 %v608_v0 }
  0x2d   :  { %610 = vmatprep.subr.bf16.mxu0 %v641_v3 }
  0x30   :  { %612 = vmatpush3.bf16.msra.mxu0 %v611_v9 }
  0xf6   :  { %v123_v42 = vpop.f32.mrb[0].mxu0 }
  0xf7   :  { %v124_v43 = vadd.f32 %v410_v39, %v123_v42  ;;  %v495_v44 = vpop.f32.mrb[1].mxu0 }
  0xf9   :  { %v127_v46 = vmax.f32 %v124_v43, 0.0 }
  0xfb   :  { %513 = vmatmul.mubr.msk.f32.vlgmr.msra.gmra.mrb[0].mxu1 %vm143_vm1, %v127_v46 }
  0xfc   :  { %591 = vmatpush3.bf16.msra.mxu1 %v590_v45  ;;  %531 = vmatprep.mubr.msk.f32.mxu1 %vm642_vm0, %v643_v6 }
  0xfd   :  { %592 = vmatprep.subr.bf16.mxu1 %v641_v3 }
 0x100   :  { %594 = vmatpush3.bf16.msra.mxu1 %v593_v49 }
 0x101   :  { %595 = vmatprep.subr.bf16.mxu1 %v641_v3 }
 0x104   :  { %597 = vmatpush3.bf16.msra.mxu1 %v596_v52 }
 0x105   :  { %598 = vmatprep.subr.bf16.mxu1 %v641_v3  ;;  %v413_v3 = vld [vmem:[%s879_s6] ss:$0 sm:$0xff] }
 0x108   :  { %600 = vmatpush3.bf16.msra.mxu1 %v599_v55 }
 0x1ce   :  { %v213_v2 = vpop.f32.mrb[0].mxu1 }
 0x1cf   :  { %v214_v4 = vadd.f32 %v411_v1, %v213_v2  ;;  %v514_v5 = vpop.f32.mrb[1].mxu1 }
 0x1d1   :  { %v217_v6 = vmax.f32 %v214_v4, 0.0 }
 0x1d3   :  { %532 = vmatmul.mubr.msk.f32.vlgmr.msra.gmra.mrb[2].mxu1 %vm143_vm1, %v217_v6 }
 0x2a6   :  { %v302_v10 = vpop.f32.mrb[2].mxu1 }
 0x2a7   :  { %v303_v11 = vadd.f32 %v413_v3, %v302_v10  ;;  %v533_v12 = vpop.f32.mrb[3].mxu1 }
 0x2a9   :  { %v306_v13 = vmax.f32 %v303_v11, 0.0 }
 0x2ab   :  { %551 = vmatmul.mubr.msk.f32.vlgmr.msra.gmra.mrb[2].mxu0 %vm143_vm1, %v306_v13 }
 0x37e   :  { %v391_v15 = vpop.f32.mrb[2].mxu0 }
 0x37f   :  { %v392_v16 = vadd.f32 %v415_v14, %v391_v15  ;;  %v552_v17 = vpop.f32.mrb[3].mxu0 }
 0x381   :  { %395 = vst [vmem:[#allocation2] sm:$0xff] %v392_v16 }
 0x382   :  { %628 = shalt.err (!%p625_p4)
}
 0x383   :  { %s629_s29 = scalar_lea.hbm %s882_s9, 128 }
 0x384   :  { %p630_p5 = scmp.ne.s32.totalorder %s882_s9, %s629_s29  ;;  %p633_p6 = scmp.lt.u32.totalorder %s629_s29, %s882_s9 }
 0x386   :  { %p635_p7 = pnand %p633_p6, %p630_p5 }
 0x388   :  { %638 = shalt.err (!%p635_p7)
}
 0x389   :  { %405 = dma.vmem_to_hbm [thread:$0]  %s403_s27, 128, %s882_s9, [#allocation3]  }
 0x38a   :  { %639 = dma.done.wait [#allocation3], 128  }
 0x38b   :  { %640 = vsyncadd [#allocation3], 4294967168 }
 0x38c   :  { %409 = vsyncpa [#allocation3], 1 }

</bundles_post_ra>
